<compile_context>
chip_gen: v5e
topology: v5e:2x2
jax: 0.10.0
libtpu: 0.0.40
codegen_flags: <defaults>
</compile_context>

<pallas_src>
import math

import numpy as np
import jax
import jax.numpy as jnp
from jax import lax
from jax.experimental import pallas as pl
from jax.experimental.pallas import tpu as pltpu

# --- static configuration (mirrors `args` in the PyTorch module) ---
META_LABELS = ['CATEGORIES', 'NAME', 'TITLE', 'STATE', 'PARTY', 'VENUE']
N_META = len(META_LABELS)            # 6  -> Conv1d in_channels
CONV_OUT = 5                         # Conv1d out_channels
KERNEL = 3                           # Conv1d / MaxPool1d kernel size, stride 1
META_EMBED_DIM = 8                   # args.meta_embed_dim
L_CONV = META_EMBED_DIM - (KERNEL - 1)            # 6
L_POOL = L_CONV - (KERNEL - 1)                    # 4
META_FEAT_DIM = CONV_OUT * L_POOL                 # 20
HIDDEN_SIZE = 32                     # args.hidden_size (SPINN encode width)
CLASSIFIER_DIM = 32                  # args.classifier_dim
N_CLASSES = 6
N_OUT_PAD = 8                        # logits padded to 8 rows (aligned stores)
D_IN = HIDDEN_SIZE + META_FEAT_DIM   # 52
LN_EPS = 1e-6

META_FLAT = N_META * META_EMBED_DIM              # 48
SHIFT_STRIDE = 24                                # 20 pooled rows + 4 pad rows (8-aligned)
CONV_ROWS = KERNEL * SHIFT_STRIDE                # 72 (3 pooling shifts)
W_ENC_ROWS = CLASSIFIER_DIM + HIDDEN_SIZE        # 64 ([W1g_enc ; I_32])

# packed tiny-parameter matrix: one column per vector
VEC_ROWS = CONV_ROWS                             # 72
VEC_COLS = 8
COL_CONV_B, COL_W1_RS, COL_B1, COL_WO_RS, COL_BO = range(5)

LANE = 128
B_TILE_MAX = 4096


def _round_up(x, m):
    return ((x + m - 1) // m) * m


def fake_classifier_kernel(wconv_ref,   # VMEM (72, 48)  f32  (resident)
                           wenc_ref,    # VMEM (64, 32)  f32  (resident)
                           wmeta_ref,   # VMEM (32, 20)  f32  (resident)
                           wout_ref,    # VMEM (8, 32)   f32  (resident)
                           sel_ref,     # VMEM (8, 6)    f32  (resident)
                           vec_ref,     # VMEM (72, 8)   f32  (resident)
                           meta_ref,    # VMEM (Bt, 48)  f32  (blocked over B)
                           enc_ref,     # VMEM (Bt, 32)  f32  (blocked over B)
                           bias_ref,    # VMEM (Bt, 6)   f32  (blocked over B)
                           out_ref):    # VMEM (8, Bt)   f32
    f32 = jnp.float32
    # contract the feature (last) axis of both operands: W (M,K) x X (Bt,K) -> (M,Bt)
    dn = (((1,), (1,)), ((), ()))

    # ---- extract_meta_features: Conv1d(6->5,k=3)+bias, ReLU, MaxPool1d(3) as one
    #      MXU matmul (im2col weights stacked over the 3 pooling shifts) + 3-way max.
    y = lax.dot_general(wconv_ref[...], meta_ref[...], dn,
                        preferred_element_type=f32)                        # (72, Bt)
    y = y + vec_ref[0:CONV_ROWS, COL_CONV_B:COL_CONV_B + 1]                # conv bias
    m = jnp.maximum(y[0:META_FEAT_DIM, :],
                    y[SHIFT_STRIDE:SHIFT_STRIDE + META_FEAT_DIM, :])
    m = jnp.maximum(m, y[2 * SHIFT_STRIDE:2 * SHIFT_STRIDE + META_FEAT_DIM, :])
    meta_feat = jnp.maximum(m, 0.0)      # relu(maxpool) == maxpool(relu); (20, Bt)

    # ---- enc side: one matmul yields both W1g_enc @ enc^T and enc^T (for LN stats)
    r = lax.dot_general(wenc_ref[...], enc_ref[...], dn,
                        preferred_element_type=f32)                        # (64, Bt)
    h_enc = r[0:CLASSIFIER_DIM, :]                                         # (32, Bt)
    enc_t = r[CLASSIFIER_DIM:CLASSIFIER_DIM + HIDDEN_SIZE, :]              # (32, Bt)

    # ---- LN1 over the virtual concat [enc ; meta_feat] (52 features).  Gain/bias
    #      are folded into mlp1; (mu, 1/std) are applied per-column AFTER the
    #      matmuls, so no (52,Bt) concat is ever materialized.
    s1 = jnp.sum(enc_t, 0, keepdims=True) + jnp.sum(meta_feat, 0, keepdims=True)
    q1 = (jnp.sum(enc_t * enc_t, 0, keepdims=True)
          + jnp.sum(meta_feat * meta_feat, 0, keepdims=True))
    mu1 = s1 * (1.0 / D_IN)
    var1 = (q1 - D_IN * mu1 * mu1) * (1.0 / (D_IN - 1))     # unbiased (n-1) variance
    inv1 = pl.reciprocal(jnp.sqrt(var1) + LN_EPS, approx=True)             # (1, Bt)

    h_meta = jnp.dot(wmeta_ref[...], meta_feat, preferred_element_type=f32)  # (32, Bt)
    h = ((h_enc + h_meta) * inv1
         - (mu1 * inv1) * vec_ref[0:CLASSIFIER_DIM, COL_W1_RS:COL_W1_RS + 1]
         + vec_ref[0:CLASSIFIER_DIM, COL_B1:COL_B1 + 1])
    h = jnp.maximum(h, 0.0)              # dropout is identity at inference

    # ---- LN2 folded into the output layer the same way
    mu2 = jnp.sum(h, 0, keepdims=True) * (1.0 / CLASSIFIER_DIM)
    q2 = jnp.sum(h * h, 0, keepdims=True)
    var2 = (q2 - CLASSIFIER_DIM * mu2 * mu2) * (1.0 / (CLASSIFIER_DIM - 1))
    inv2 = pl.reciprocal(jnp.sqrt(var2) + LN_EPS, approx=True)

    logits = jnp.dot(wout_ref[...], h, preferred_element_type=f32)         # (8, Bt)
    # transpose the (Bt, 6) CREDIT_VEC biases to (8, Bt) on the MXU via a small
    # selection matrix instead of a wrapper-side transpose/pad pass.
    bias_t = lax.dot_general(sel_ref[...], bias_ref[...], dn,
                             preferred_element_type=f32)                   # (8, Bt)
    out_ref[...] = (logits * inv2
                    - (mu2 * inv2) * vec_ref[0:N_OUT_PAD, COL_WO_RS:COL_WO_RS + 1]
                    + vec_ref[0:N_OUT_PAD, COL_BO:COL_BO + 1]
                    + bias_t)


def prepare_params(params):
    """One-time parameter prep: im2col conv matrix, LN folding, padding."""
    f32 = np.float32
    cw = np.asarray(params['conv_w'], f32)          # (5, 6, 3)
    cb = np.asarray(params['conv_b'], f32)          # (5,)

    # Banded im2col weight matrix stacked over the KERNEL pooling shifts.
    # Row r = s*24 + o*4 + p computes conv_out[o, p+s]; the 3-way max over s in
    # the kernel reproduces MaxPool1d(3, stride=1).  Each shift section is padded
    # 20 -> 24 rows so the in-kernel slices stay sublane-aligned.
    w_conv = np.zeros((CONV_ROWS, META_FLAT), f32)
    b_conv = np.zeros((CONV_ROWS,), f32)
    for s in range(KERNEL):
        for o in range(CONV_OUT):
            for p in range(L_POOL):
                r = s * SHIFT_STRIDE + o * L_POOL + p
                b_conv[r] = cb[o]
                for c in range(N_META):
                    for k in range(KERNEL):
                        w_conv[r, c * META_EMBED_DIM + p + s + k] = cw[o, c, k]

    # Fold LN1 gain/bias into mlp1 and LN2 gain/bias into the output layer:
    #   W @ (g*(z-mu)/std + b_ln) + b  ==  (W*g) @ z / std - mu/std * rowsum(W*g)
    #                                      + (b + W @ b_ln)
    g1 = np.asarray(params['ln1_g'], f32); b1_ln = np.asarray(params['ln1_b'], f32)
    w1 = np.asarray(params['mlp1_w'], f32)                     # (32, 52)
    w1g = w1 * g1[None, :]
    b1p = np.asarray(params['mlp1_b'], f32) + w1 @ b1_ln       # (32,)
    w1_rs = w1g.sum(axis=1)                                    # (32,)

    g2 = np.asarray(params['ln2_g'], f32); b2_ln = np.asarray(params['ln2_b'], f32)
    wo = np.asarray(params['out_w'], f32)                      # (6, 32)
    wog = wo * g2[None, :]
    bop = np.asarray(params['out_b'], f32) + wo @ b2_ln        # (6,)
    wo_rs = wog.sum(axis=1)                                    # (6,)

    # enc-side weights: [W1g_enc ; I_32] -> one matmul gives W1g_enc@enc^T and enc^T
    w_enc = np.zeros((W_ENC_ROWS, HIDDEN_SIZE), f32)
    w_enc[:CLASSIFIER_DIM] = w1g[:, :HIDDEN_SIZE]
    w_enc[CLASSIFIER_DIM:CLASSIFIER_DIM + HIDDEN_SIZE] = np.eye(HIDDEN_SIZE, dtype=f32)

    w_meta = np.ascontiguousarray(w1g[:, HIDDEN_SIZE:])        # (32, 20)

    w_out = np.zeros((N_OUT_PAD, CLASSIFIER_DIM), f32)         # logits padded to 8
    w_out[:N_CLASSES] = wog

    sel = np.zeros((N_OUT_PAD, N_CLASSES), f32)                # bias transpose matrix
    sel[:N_CLASSES, :N_CLASSES] = np.eye(N_CLASSES, dtype=f32)

    vec = np.zeros((VEC_ROWS, VEC_COLS), f32)
    vec[:CONV_ROWS, COL_CONV_B] = b_conv
    vec[:CLASSIFIER_DIM, COL_W1_RS] = w1_rs
    vec[:CLASSIFIER_DIM, COL_B1] = b1p
    vec[:N_CLASSES, COL_WO_RS] = wo_rs
    vec[:N_CLASSES, COL_BO] = bop

    return {
        'w_conv': jnp.asarray(w_conv), 'w_enc': jnp.asarray(w_enc),
        'w_meta': jnp.asarray(w_meta), 'w_out': jnp.asarray(w_out),
        'sel': jnp.asarray(sel), 'vec': jnp.asarray(vec),
    }


def fake_classifier_forward(meta_mat, encode, out_biases, prep):
    """meta_mat: (B, 6, META_EMBED_DIM); encode: (B, H); out_biases: (B, 6)."""
    B = encode.shape[0]
    # natural (batch-major) layouts straight into the kernel: no wrapper-side
    # transpose / pad / cast passes over the activations.
    meta_x = meta_mat.reshape(B, META_FLAT).astype(jnp.float32)
    enc = encode.astype(jnp.float32)
    bias = out_biases.astype(jnp.float32)

    if B <= LANE:
        # single tile, full-array blocks (no padding, no (8,128) constraint)
        bt, bp = B, B
    else:
        bp = _round_up(B, LANE)
        # large tiles to amortize the ~0.35us/step pipeline overhead, but keep
        # >= 2 grid steps so both v7x TensorCores get work.  Inputs are left
        # unpadded; any partial last block is handled by Pallas (OOB reads are
        # unspecified but stay confined to the discarded padding columns, OOB
        # writes are dropped).
        bt = min(B_TILE_MAX, _round_up(pl.cdiv(bp, 2), LANE))
    grid = (pl.cdiv(bp, bt),)

    out = pl.pallas_call(
        fake_classifier_kernel,
        out_shape=jax.ShapeDtypeStruct((N_OUT_PAD, bp), jnp.float32),
        grid=grid,
        in_specs=[
            # resident weights / constants (constant index_map -> fetched once)
            pl.BlockSpec((CONV_ROWS, META_FLAT), lambda i: (0, 0)),
            pl.BlockSpec((W_ENC_ROWS, HIDDEN_SIZE), lambda i: (0, 0)),
            pl.BlockSpec((CLASSIFIER_DIM, META_FEAT_DIM), lambda i: (0, 0)),
            pl.BlockSpec((N_OUT_PAD, CLASSIFIER_DIM), lambda i: (0, 0)),
            pl.BlockSpec((N_OUT_PAD, N_CLASSES), lambda i: (0, 0)),
            pl.BlockSpec((VEC_ROWS, VEC_COLS), lambda i: (0, 0)),
            # activations, blocked over the batch (row) axis in natural layout
            pl.BlockSpec((bt, META_FLAT), lambda i: (i, 0)),
            pl.BlockSpec((bt, HIDDEN_SIZE), lambda i: (i, 0)),
            pl.BlockSpec((bt, N_CLASSES), lambda i: (i, 0)),
        ],
        # batch on the lane axis -> lane-dense output stores
        out_specs=pl.BlockSpec((N_OUT_PAD, bt), lambda i: (0, i)),
        compiler_params=pltpu.CompilerParams(
            dimension_semantics=("parallel",),
            vmem_limit_bytes=32 * 1024 * 1024,
        ),
    )(prep['w_conv'], prep['w_enc'], prep['w_meta'], prep['w_out'],
      prep['sel'], prep['vec'], meta_x, enc, bias)

    return out[:N_CLASSES, :B].T                                            # (B, 6)


# ---------------- pure-JAX reference (f32) for a sanity check ----------------
def reference_forward(meta_mat, encode, out_biases, params):
    B = encode.shape[0]
    x = meta_mat.astype(jnp.float32)                                        # (B, 6, 8)
    w, b = params['conv_w'], params['conv_b']
    conv = jnp.stack([jnp.einsum('bck,ock->bo', x[:, :, l:l + KERNEL], w)
                      for l in range(L_CONV)], axis=-1) + b[None, :, None]  # (B,5,6)
    conv = jnp.maximum(conv, 0.0)
    pool = jnp.stack([conv[:, :, p:p + KERNEL].max(-1)
                      for p in range(L_POOL)], axis=-1)                     # (B,5,4)
    meta_feat = pool.reshape(B, -1)                                         # (B,20)

    def ln(z, g, bb):
        mu = z.mean(-1, keepdims=True)
        var = jnp.sum((z - mu) ** 2, -1, keepdims=True) / (z.shape[-1] - 1)
        return g * (z - mu) / (jnp.sqrt(var) + LN_EPS) + bb

    mlp_in = jnp.concatenate([encode, meta_feat], axis=-1)
    feats = ln(mlp_in, params['ln1_g'], params['ln1_b'])
    h = jnp.maximum(feats @ params['mlp1_w'].T + params['mlp1_b'], 0.0)
    h = ln(h, params['ln2_g'], params['ln2_b'])
    return h @ params['out_w'].T + params['out_b'] + out_biases


def he_init(key, shape):
    fan_in = shape[1]
    return jax.random.normal(key, shape, jnp.float32) * math.sqrt(2.0 / fan_in)


if __name__ == "__main__":
    key = jax.random.PRNGKey(0)
    keys = jax.random.split(key, 16)

    B = 4
    meta_vocab_size = 30
    n_cats = 3     # fixed number of CATEGORIES ids per example (synthetic)

    meta_embed = jax.random.normal(keys[0], (meta_vocab_size, META_EMBED_DIM),
                                   jnp.float32) * 0.1
    params = {
        'conv_w': jax.random.normal(keys[1], (CONV_OUT, N_META, KERNEL), jnp.float32) * 0.2,
        'conv_b': jax.random.normal(keys[2], (CONV_OUT,), jnp.float32) * 0.1,
        'ln1_g': 1.0 + 0.1 * jax.random.normal(keys[3], (D_IN,), jnp.float32),
        'ln1_b': 0.1 * jax.random.normal(keys[4], (D_IN,), jnp.float32),
        'mlp1_w': he_init(keys[5], (CLASSIFIER_DIM, D_IN)),
        'mlp1_b': 0.1 * jax.random.normal(keys[6], (CLASSIFIER_DIM,), jnp.float32),
        'ln2_g': 1.0 + 0.1 * jax.random.normal(keys[7], (CLASSIFIER_DIM,), jnp.float32),
        'ln2_b': 0.1 * jax.random.normal(keys[8], (CLASSIFIER_DIM,), jnp.float32),
        'out_w': he_init(keys[9], (N_CLASSES, CLASSIFIER_DIM)),
        'out_b': 0.1 * jax.random.normal(keys[10], (N_CLASSES,), jnp.float32),
    }

    # --- get_meta_mat (glue: embedding gathers + per-example category mean) ---
    cat_ids = jax.random.randint(keys[11], (B, n_cats), 0, meta_vocab_size)
    other_ids = jax.random.randint(keys[12], (B, N_META - 1), 0, meta_vocab_size)
    avg_cat = jnp.mean(meta_embed[cat_ids], axis=1, keepdims=True)       # (B, 1, Dm)
    other = meta_embed[other_ids]                                        # (B, 5, Dm)
    meta_mat = jnp.concatenate([avg_cat, other], axis=1)                 # (B, 6, Dm)

    # --- build_biases (glue: normalize CREDIT_VEC rows) ---
    credit = jax.random.uniform(keys[13], (B, N_CLASSES), jnp.float32)
    csum = jnp.sum(credit, axis=-1, keepdims=True)
    out_biases = jnp.where(csum > 0, credit / csum, 1.0 / 6.0)

    # TODO(synk): the SPINN shift-reduce TreeLSTM encoder (self.spinn) and the word
    # embedding lookup that only feeds it have no clean Pallas equivalent; `encode`
    # (its (B, hidden_size) output) is taken here as a precomputed input.
    encode = jax.random.normal(keys[14], (B, HIDDEN_SIZE), jnp.float32)

    prep = prepare_params(params)                      # one-time parameter prep
    forward = jax.jit(fake_classifier_forward)

    out = jax.block_until_ready(forward(meta_mat, encode, out_biases, prep))
    assert out.shape == (B, N_CLASSES) and out.dtype == jnp.float32

    ref = jax.block_until_ready(reference_forward(meta_mat, encode, out_biases, params))
    np.testing.assert_allclose(np.asarray(out), np.asarray(ref), rtol=5e-2, atol=5e-2)

    print("KERNEL_OK")
</pallas_src>

<mosaic_0001>
module attributes {stable_mosaic.version = 11 : i64} {
  func.func @fake_classifier_kernel(%arg0: i32, %arg1: memref<72x48xf32, #tpu.memory_space<vmem>>, %arg2: memref<64x32xf32, #tpu.memory_space<vmem>>, %arg3: memref<32x20xf32, #tpu.memory_space<vmem>>, %arg4: memref<8x32xf32, #tpu.memory_space<vmem>>, %arg5: memref<8x6xf32, #tpu.memory_space<vmem>>, %arg6: memref<72x8xf32, #tpu.memory_space<vmem>>, %arg7: memref<4x48xf32, #tpu.memory_space<vmem>>, %arg8: memref<4x32xf32, #tpu.memory_space<vmem>>, %arg9: memref<4x6xf32, #tpu.memory_space<vmem>>, %arg10: memref<8x4xf32, #tpu.memory_space<vmem>>) attributes {dimension_semantics = [#tpu.dimension_semantics<parallel>], iteration_bounds = array<i64: 1>, scalar_prefetch = 0 : i64, scratch_operands = 0 : i64, tpu.core_type = #tpu.core_type<tc>, window_params = [{pipeline_mode = #tpu.pipeline_mode<synchronous>, transform_indices = @transform_0, window_bounds = array<i64: 72, 48>}, {pipeline_mode = #tpu.pipeline_mode<synchronous>, transform_indices = @transform_1, window_bounds = array<i64: 64, 32>}, {pipeline_mode = #tpu.pipeline_mode<synchronous>, transform_indices = @transform_2, window_bounds = array<i64: 32, 20>}, {pipeline_mode = #tpu.pipeline_mode<synchronous>, transform_indices = @transform_3, window_bounds = array<i64: 8, 32>}, {pipeline_mode = #tpu.pipeline_mode<synchronous>, transform_indices = @transform_4, window_bounds = array<i64: 8, 6>}, {pipeline_mode = #tpu.pipeline_mode<synchronous>, transform_indices = @transform_5, window_bounds = array<i64: 72, 8>}, {transform_indices = @transform_6, window_bounds = array<i64: 4, 48>}, {transform_indices = @transform_7, window_bounds = array<i64: 4, 32>}, {transform_indices = @transform_8, window_bounds = array<i64: 4, 6>}, {transform_indices = @transform_9, window_bounds = array<i64: 8, 4>}]} {
    %c0 = arith.constant 0 : index
    %c0_0 = arith.constant 0 : index
    %0 = vector.load %arg1[%c0, %c0_0] : memref<72x48xf32, #tpu.memory_space<vmem>>, vector<72x48xf32>
    %c0_1 = arith.constant 0 : index
    %c0_2 = arith.constant 0 : index
    %1 = vector.load %arg7[%c0_1, %c0_2] : memref<4x48xf32, #tpu.memory_space<vmem>>, vector<4x48xf32>
    %cst = arith.constant dense<0.000000e+00> : vector<72x4xf32>
    %2 = tpu.matmul %0, %1, %cst {dimension_numbers = #tpu.dot_dimension_numbers<[1], [1], [0], [0], [0, 0, 1, 0], [], []>} : vector<72x48xf32>, vector<4x48xf32>, vector<72x4xf32> -> vector<72x4xf32>
    %c0_3 = arith.constant 0 : index
    %c0_4 = arith.constant 0 : index
    %3 = vector.load %arg6[%c0_3, %c0_4] : memref<72x8xf32, #tpu.memory_space<vmem>>, vector<72x1xf32>
    %4 = vector.broadcast %3 : vector<72x1xf32> to vector<72x4xf32>
    %5 = arith.addf %2, %4 : vector<72x4xf32>
    %6 = vector.extract_strided_slice %5 {offsets = [0, 0], sizes = [20, 4], strides = [1, 1]} : vector<72x4xf32> to vector<20x4xf32>
    %7 = vector.extract_strided_slice %5 {offsets = [24, 0], sizes = [20, 4], strides = [1, 1]} : vector<72x4xf32> to vector<20x4xf32>
    %8 = arith.maximumf %6, %7 : vector<20x4xf32>
    %9 = vector.extract_strided_slice %5 {offsets = [48, 0], sizes = [20, 4], strides = [1, 1]} : vector<72x4xf32> to vector<20x4xf32>
    %10 = arith.maximumf %8, %9 : vector<20x4xf32>
    %cst_5 = arith.constant 0.000000e+00 : f32
    %11 = vector.broadcast %cst_5 : f32 to vector<20x4xf32>
    %12 = arith.maximumf %10, %11 : vector<20x4xf32>
    %c0_6 = arith.constant 0 : index
    %c0_7 = arith.constant 0 : index
    %13 = vector.load %arg2[%c0_6, %c0_7] : memref<64x32xf32, #tpu.memory_space<vmem>>, vector<64x32xf32>
    %c0_8 = arith.constant 0 : index
    %c0_9 = arith.constant 0 : index
    %14 = vector.load %arg8[%c0_8, %c0_9] : memref<4x32xf32, #tpu.memory_space<vmem>>, vector<4x32xf32>
    %cst_10 = arith.constant dense<0.000000e+00> : vector<64x4xf32>
    %15 = tpu.matmul %13, %14, %cst_10 {dimension_numbers = #tpu.dot_dimension_numbers<[1], [1], [0], [0], [0, 0, 1, 0], [], []>} : vector<64x32xf32>, vector<4x32xf32>, vector<64x4xf32> -> vector<64x4xf32>
    %16 = vector.extract_strided_slice %15 {offsets = [0, 0], sizes = [32, 4], strides = [1, 1]} : vector<64x4xf32> to vector<32x4xf32>
    %17 = vector.extract_strided_slice %15 {offsets = [32, 0], sizes = [32, 4], strides = [1, 1]} : vector<64x4xf32> to vector<32x4xf32>
    %cst_11 = arith.constant dense<0.000000e+00> : vector<4xf32>
    %18 = vector.multi_reduction <add>, %17, %cst_11 [0] : vector<32x4xf32> to vector<4xf32>
    %19 = vector.shape_cast %18 : vector<4xf32> to vector<1x4xf32>
    %cst_12 = arith.constant dense<0.000000e+00> : vector<4xf32>
    %20 = vector.multi_reduction <add>, %12, %cst_12 [0] : vector<20x4xf32> to vector<4xf32>
    %21 = vector.shape_cast %20 : vector<4xf32> to vector<1x4xf32>
    %22 = arith.addf %19, %21 : vector<1x4xf32>
    %23 = arith.mulf %17, %17 : vector<32x4xf32>
    %cst_13 = arith.constant dense<0.000000e+00> : vector<4xf32>
    %24 = vector.multi_reduction <add>, %23, %cst_13 [0] : vector<32x4xf32> to vector<4xf32>
    %25 = vector.shape_cast %24 : vector<4xf32> to vector<1x4xf32>
    %26 = arith.mulf %12, %12 : vector<20x4xf32>
    %cst_14 = arith.constant dense<0.000000e+00> : vector<4xf32>
    %27 = vector.multi_reduction <add>, %26, %cst_14 [0] : vector<20x4xf32> to vector<4xf32>
    %28 = vector.shape_cast %27 : vector<4xf32> to vector<1x4xf32>
    %29 = arith.addf %25, %28 : vector<1x4xf32>
    %cst_15 = arith.constant 0.0192307699 : f32
    %30 = vector.broadcast %cst_15 : f32 to vector<1x4xf32>
    %31 = arith.mulf %22, %30 : vector<1x4xf32>
    %cst_16 = arith.constant 5.200000e+01 : f32
    %32 = vector.broadcast %cst_16 : f32 to vector<1x4xf32>
    %33 = arith.mulf %32, %31 : vector<1x4xf32>
    %34 = arith.mulf %33, %31 : vector<1x4xf32>
    %35 = arith.subf %29, %34 : vector<1x4xf32>
    %cst_17 = arith.constant 0.0196078438 : f32
    %36 = vector.broadcast %cst_17 : f32 to vector<1x4xf32>
    %37 = arith.mulf %35, %36 : vector<1x4xf32>
    %38 = math.sqrt %37 : vector<1x4xf32>
    %cst_18 = arith.constant 9.99999997E-7 : f32
    %39 = vector.broadcast %cst_18 : f32 to vector<1x4xf32>
    %40 = arith.addf %38, %39 : vector<1x4xf32>
    %41 = tpu.reciprocal %40 {approx = true} : vector<1x4xf32> -> vector<1x4xf32>
    %c0_19 = arith.constant 0 : index
    %c0_20 = arith.constant 0 : index
    %42 = vector.load %arg3[%c0_19, %c0_20] : memref<32x20xf32, #tpu.memory_space<vmem>>, vector<32x20xf32>
    %cst_21 = arith.constant dense<0.000000e+00> : vector<32x4xf32>
    %43 = tpu.matmul %42, %12, %cst_21 {dimension_numbers = #tpu.dot_dimension_numbers<[1], [0], [0], [1], [0, 0, 1, 1], [], []>} : vector<32x20xf32>, vector<20x4xf32>, vector<32x4xf32> -> vector<32x4xf32>
    %44 = arith.addf %16, %43 : vector<32x4xf32>
    %45 = vector.broadcast %41 : vector<1x4xf32> to vector<32x4xf32>
    %46 = arith.mulf %44, %45 : vector<32x4xf32>
    %47 = arith.mulf %31, %41 : vector<1x4xf32>
    %c0_22 = arith.constant 0 : index
    %c1 = arith.constant 1 : index
    %48 = vector.load %arg6[%c0_22, %c1] : memref<72x8xf32, #tpu.memory_space<vmem>>, vector<32x1xf32>
    %49 = vector.broadcast %47 : vector<1x4xf32> to vector<32x4xf32>
    %50 = vector.broadcast %48 : vector<32x1xf32> to vector<32x4xf32>
    %51 = arith.mulf %49, %50 : vector<32x4xf32>
    %52 = arith.subf %46, %51 : vector<32x4xf32>
    %c0_23 = arith.constant 0 : index
    %c2 = arith.constant 2 : index
    %53 = vector.load %arg6[%c0_23, %c2] : memref<72x8xf32, #tpu.memory_space<vmem>>, vector<32x1xf32>
    %54 = vector.broadcast %53 : vector<32x1xf32> to vector<32x4xf32>
    %55 = arith.addf %52, %54 : vector<32x4xf32>
    %cst_24 = arith.constant 0.000000e+00 : f32
    %56 = vector.broadcast %cst_24 : f32 to vector<32x4xf32>
    %57 = arith.maximumf %55, %56 : vector<32x4xf32>
    %cst_25 = arith.constant dense<0.000000e+00> : vector<4xf32>
    %58 = vector.multi_reduction <add>, %57, %cst_25 [0] : vector<32x4xf32> to vector<4xf32>
    %59 = vector.shape_cast %58 : vector<4xf32> to vector<1x4xf32>
    %cst_26 = arith.constant 3.125000e-02 : f32
    %60 = vector.broadcast %cst_26 : f32 to vector<1x4xf32>
    %61 = arith.mulf %59, %60 : vector<1x4xf32>
    %62 = arith.mulf %57, %57 : vector<32x4xf32>
    %cst_27 = arith.constant dense<0.000000e+00> : vector<4xf32>
    %63 = vector.multi_reduction <add>, %62, %cst_27 [0] : vector<32x4xf32> to vector<4xf32>
    %64 = vector.shape_cast %63 : vector<4xf32> to vector<1x4xf32>
    %cst_28 = arith.constant 3.200000e+01 : f32
    %65 = vector.broadcast %cst_28 : f32 to vector<1x4xf32>
    %66 = arith.mulf %65, %61 : vector<1x4xf32>
    %67 = arith.mulf %66, %61 : vector<1x4xf32>
    %68 = arith.subf %64, %67 : vector<1x4xf32>
    %cst_29 = arith.constant 0.0322580636 : f32
    %69 = vector.broadcast %cst_29 : f32 to vector<1x4xf32>
    %70 = arith.mulf %68, %69 : vector<1x4xf32>
    %71 = math.sqrt %70 : vector<1x4xf32>
    %cst_30 = arith.constant 9.99999997E-7 : f32
    %72 = vector.broadcast %cst_30 : f32 to vector<1x4xf32>
    %73 = arith.addf %71, %72 : vector<1x4xf32>
    %74 = tpu.reciprocal %73 {approx = true} : vector<1x4xf32> -> vector<1x4xf32>
    %c0_31 = arith.constant 0 : index
    %c0_32 = arith.constant 0 : index
    %75 = vector.load %arg4[%c0_31, %c0_32] : memref<8x32xf32, #tpu.memory_space<vmem>>, vector<8x32xf32>
    %cst_33 = arith.constant dense<0.000000e+00> : vector<8x4xf32>
    %76 = tpu.matmul %75, %57, %cst_33 {dimension_numbers = #tpu.dot_dimension_numbers<[1], [0], [0], [1], [0, 0, 1, 1], [], []>} : vector<8x32xf32>, vector<32x4xf32>, vector<8x4xf32> -> vector<8x4xf32>
    %c0_34 = arith.constant 0 : index
    %c0_35 = arith.constant 0 : index
    %77 = vector.load %arg5[%c0_34, %c0_35] : memref<8x6xf32, #tpu.memory_space<vmem>>, vector<8x6xf32>
    %c0_36 = arith.constant 0 : index
    %c0_37 = arith.constant 0 : index
    %78 = vector.load %arg9[%c0_36, %c0_37] : memref<4x6xf32, #tpu.memory_space<vmem>>, vector<4x6xf32>
    %cst_38 = arith.constant dense<0.000000e+00> : vector<8x4xf32>
    %79 = tpu.matmul %77, %78, %cst_38 {dimension_numbers = #tpu.dot_dimension_numbers<[1], [1], [0], [0], [0, 0, 1, 0], [], []>} : vector<8x6xf32>, vector<4x6xf32>, vector<8x4xf32> -> vector<8x4xf32>
    %80 = vector.broadcast %74 : vector<1x4xf32> to vector<8x4xf32>
    %81 = arith.mulf %76, %80 : vector<8x4xf32>
    %82 = arith.mulf %61, %74 : vector<1x4xf32>
    %c0_39 = arith.constant 0 : index
    %c3 = arith.constant 3 : index
    %83 = vector.load %arg6[%c0_39, %c3] : memref<72x8xf32, #tpu.memory_space<vmem>>, vector<8x1xf32>
    %84 = vector.broadcast %82 : vector<1x4xf32> to vector<8x4xf32>
    %85 = vector.broadcast %83 : vector<8x1xf32> to vector<8x4xf32>
    %86 = arith.mulf %84, %85 : vector<8x4xf32>
    %87 = arith.subf %81, %86 : vector<8x4xf32>
    %c0_40 = arith.constant 0 : index
    %c4 = arith.constant 4 : index
    %88 = vector.load %arg6[%c0_40, %c4] : memref<72x8xf32, #tpu.memory_space<vmem>>, vector<8x1xf32>
    %89 = vector.broadcast %88 : vector<8x1xf32> to vector<8x4xf32>
    %90 = arith.addf %87, %89 : vector<8x4xf32>
    %91 = arith.addf %90, %79 : vector<8x4xf32>
    %c0_41 = arith.constant 0 : index
    %c0_42 = arith.constant 0 : index
    %92 = vector.load %arg10[%c0_41, %c0_42] : memref<8x4xf32, #tpu.memory_space<vmem>>, vector<8x4xf32>
    tpu.vector_store %arg10[%c0_41, %c0_42], %91 {strides = array<i32>} : memref<8x4xf32, #tpu.memory_space<vmem>>, vector<8x4xf32>,
    return
  }
  func.func @transform_0(%arg0: i32) -> (i32, i32) {
    %c0_i32 = arith.constant 0 : i32
    %c0_i32_0 = arith.constant 0 : i32
    %c0_i32_1 = arith.constant 0 : i32
    return %c0_i32, %c0_i32_0 : i32, i32
  }
  func.func @transform_1(%arg0: i32) -> (i32, i32) {
    %c0_i32 = arith.constant 0 : i32
    %c0_i32_0 = arith.constant 0 : i32
    %c0_i32_1 = arith.constant 0 : i32
    return %c0_i32, %c0_i32_0 : i32, i32
  }
  func.func @transform_2(%arg0: i32) -> (i32, i32) {
    %c0_i32 = arith.constant 0 : i32
    %c0_i32_0 = arith.constant 0 : i32
    %c0_i32_1 = arith.constant 0 : i32
    return %c0_i32, %c0_i32_0 : i32, i32
  }
  func.func @transform_3(%arg0: i32) -> (i32, i32) {
    %c0_i32 = arith.constant 0 : i32
    %c0_i32_0 = arith.constant 0 : i32
    %c0_i32_1 = arith.constant 0 : i32
    return %c0_i32, %c0_i32_0 : i32, i32
  }
  func.func @transform_4(%arg0: i32) -> (i32, i32) {
    %c0_i32 = arith.constant 0 : i32
    %c0_i32_0 = arith.constant 0 : i32
    %c0_i32_1 = arith.constant 0 : i32
    return %c0_i32, %c0_i32_0 : i32, i32
  }
  func.func @transform_5(%arg0: i32) -> (i32, i32) {
    %c0_i32 = arith.constant 0 : i32
    %c0_i32_0 = arith.constant 0 : i32
    %c0_i32_1 = arith.constant 0 : i32
    return %c0_i32, %c0_i32_0 : i32, i32
  }
  func.func @transform_6(%arg0: i32) -> (i32, i32) {
    %c0_i32 = arith.constant 0 : i32
    %c0_i32_0 = arith.constant 0 : i32
    return %arg0, %c0_i32 : i32, i32
  }
  func.func @transform_7(%arg0: i32) -> (i32, i32) {
    %c0_i32 = arith.constant 0 : i32
    %c0_i32_0 = arith.constant 0 : i32
    return %arg0, %c0_i32 : i32, i32
  }
  func.func @transform_8(%arg0: i32) -> (i32, i32) {
    %c0_i32 = arith.constant 0 : i32
    %c0_i32_0 = arith.constant 0 : i32
    return %arg0, %c0_i32 : i32, i32
  }
  func.func @transform_9(%arg0: i32) -> (i32, i32) {
    %c0_i32 = arith.constant 0 : i32
    %c0_i32_0 = arith.constant 0 : i32
    return %c0_i32, %arg0 : i32, i32
  }
}

</mosaic_0001>

<bundles_post_ra>
// kernel: fake_classifier_forward.1
= control target key start
LH: loop header
LB: loop body
LE: loop exit
PB: predicated region body
PF: predicated region fallthrough
CT: control target
= control target key end

     0   :  { %vm96_vm0 = vcmask 392192   ;;  %vm189_vm1 = vcmask 261120   ;;  %v628_v2 = vmov 0   ;;  %v629_v29 = vmov 1   ;;  %s880_s6 = inlined_call_operand.vmem [shape: f32[4,48], index: 6, kind: input, shape index: {}]   ;;  %s881_s0 = inlined_call_operand.vmem [shape: f32[72,48], index: 0, kind: input, shape index: {}]   ;;  %s882_s7 = inlined_call_operand.vmem [shape: f32[4,32], index: 7, kind: input, shape index: {}]   ;;  %s883_s1 = inlined_call_operand.vmem [shape: f32[64,32], index: 1, kind: input, shape index: {}]   ;;  %s884_s5 = inlined_call_operand.vmem [shape: f32[72,8], index: 5, kind: input, shape index: {}]   ;;  %s885_s2 = inlined_call_operand.vmem [shape: f32[32,20], index: 2, kind: input, shape index: {}]   ;;  %s886_s3 = inlined_call_operand.vmem [shape: f32[8,32], index: 3, kind: input, shape index: {}]   ;;  %s887_s8 = inlined_call_operand.vmem [shape: f32[4,6], index: 8, kind: input, shape index: {}]   ;;  %s888_s4 = inlined_call_operand.vmem [shape: f32[8,6], index: 4, kind: input, shape index: {}]   ;;  %s889_s9 = inlined_call_operand.vmem [shape: f32[8,4], index: 9, kind: output, shape index: {}]  }
   0x1   :  { %v41_v0 = vld [vmem:[%s880_s6] sm:$0xf]  ;;  %609 = vset.pattern.permute.xlu1 %v628_v2  ;;  %608 = vset.pattern.permute.xlu0 %v628_v2  ;;  %v38_v5 = vld [vmem:[%s881_s0 + $0x30] sm:$0xff]  ;;  %v709_v7 = vld [vmem:[%s884_s5 + $0x8] sm:$0xff]  ;;  %vm258_vm2 = vcmask 31744   ;;  %vm275_vm3 = vcmask 27648  }
   0x2   :  { %v188_v1 = vld [vmem:[%s882_s7] sm:$0xf]  ;;  %574 = vmatpush.xpose.msk.msra.mxu0 %vm96_vm0, %v41_v0  ;;  %601 = vmatpush.xpose.msk.msra.mxu3 %vm96_vm0, %v41_v0  ;;  %v704_v6 = vld [vmem:[%s884_s5 + $0x10] sm:$0xff]  ;;  %v33_v10 = vld [vmem:[%s881_s0 + $0x8] sm:$0xff]  ;;  %vm353_vm4 = vcmask 1043456   ;;  %vm340_vm5 = vcmask 162816  }
   0x3   :  { %v32_v3 = vld [vmem:[%s881_s0] sm:$0xff]  ;;  %584 = vmatpush.xpose.msk.msra.mxu1 %vm189_vm1, %v188_v1  ;;  %610 = vset.pattern.permute.xlu2 %v628_v2  ;;  %v186_v9 = vld [vmem:[%s883_s1 + $0x30] sm:$0xff]  ;;  %v181_v11 = vld [vmem:[%s883_s1 + $0x8] sm:$0xff]  ;;  %vm526_vm8 = vcmask 48128  }
   0x4   :  { %v180_v4 = vld [vmem:[%s883_s1] sm:$0xff]  ;;  %602 = vmatpush.xpose.msk.msra.mxu2 %vm189_vm1, %v188_v1  ;;  %63 = vperm.xlu0 %608, %v704_v6   ;;  %v39_v12 = vld [vmem:[%s881_s0 + $0x38] sm:$0xff]  ;;  %v47_v13 = vld [vmem:[%s884_s5 + $0x28] sm:$0xff] }
   0x5   :  { %575 = vmatmul.msk.f32.vlgmr.msra.gmra.mxu0 %vm96_vm0, %v32_v3  ;;  %v50_v8 = vld [vmem:[%s884_s5 + $0x40] sm:$0xff]  ;;  %581 = vmatmul.msk.f32.vlgmr.msra.gmra.mxu3 %vm96_vm0, %v38_v5  ;;  %v187_v16 = vld [vmem:[%s883_s1 + $0x38] sm:$0xff]  ;;  %v34_v17 = vld [vmem:[%s881_s0 + $0x10] sm:$0xff] }
   0x6   :  { %585 = vmatmul.msk.f32.vlgmr.msra.gmra.mxu1 %vm189_vm1, %v180_v4  ;;  %58 = vperm.xlu1 %609, %v709_v7   ;;  %v46_v14 = vld [vmem:[%s884_s5 + $0x20] sm:$0xff]  ;;  %v182_v18 = vld [vmem:[%s883_s1 + $0x10] sm:$0xff]  ;;  %v764_v20 = vld [vmem:[%s884_s5 + $0x18] sm:$0xff] }
   0x7   :  { %93 = vperm.xlu2 %610, %v50_v8   ;;  %591 = vmatmul.msk.f32.vlgmr.msra.gmra.mxu2 %vm189_vm1, %v186_v9  ;;  %v742_v15 = vld [vmem:[%s884_s5] sm:$0xff]  ;;  %v49_v21 = vld [vmem:[%s884_s5 + $0x38] sm:$0xff]  ;;  %v48_v22 = vld [vmem:[%s884_s5 + $0x30] sm:$0xff] }
   0x8   :  { %v40_v19 = vld [vmem:[%s881_s0 + $0x40] sm:$0xff]  ;;  %v35_v23 = vld [vmem:[%s881_s0 + $0x18] sm:$0xff]  ;;  %v37_v27 = vld [vmem:[%s881_s0 + $0x28] sm:$0xff] }
   0x9   :  { %v183_v24 = vld [vmem:[%s883_s1 + $0x18] sm:$0xff]  ;;  %v36_v25 = vld [vmem:[%s881_s0 + $0x20] sm:$0xff]  ;;  %v185_v28 = vld [vmem:[%s883_s1 + $0x28] sm:$0xff] }
   0xa   :  { %v184_v26 = vld [vmem:[%s883_s1 + $0x20] sm:$0xff] }
   0xc   :  { %78 = vperm.xlu0 %608, %v47_v13  }
   0xd   :  { %576 = vmatmul.msk.f32.gmra.mxu0 %vm96_vm0, %v33_v10  ;;  %582 = vmatmul.msk.f32.gmra.mxu3 %vm96_vm0, %v39_v12 }
   0xe   :  { %586 = vmatmul.msk.f32.gmra.mxu1 %vm189_vm1, %v181_v11  ;;  %73 = vperm.xlu1 %609, %v46_v14  }
   0xf   :  { %53 = vperm.xlu2 %610, %v742_v15   ;;  %592 = vmatmul.msk.f32.gmra.mxu2 %vm189_vm1, %v187_v16 }
  0x14   :  { %68 = vperm.xlu0 %608, %v764_v20  }
  0x15   :  { %577 = vmatmul.msk.f32.gmra.mxu0 %vm96_vm0, %v34_v17  ;;  %583 = vmatmul.msk.f32.gmra.mxu3 %vm96_vm0, %v40_v19 }
  0x16   :  { %587 = vmatmul.msk.f32.gmra.mxu1 %vm189_vm1, %v182_v18  ;;  %88 = vperm.xlu1 %609, %v49_v21  }
  0x17   :  { %83 = vperm.xlu2 %610, %v48_v22  }
  0x1c   :  { %611 = vset.pattern.permute.xlu0 %v629_v29 }
  0x1d   :  { %578 = vmatmul.msk.f32.gmra.mxu0 %vm96_vm0, %v35_v23  ;;  %416 = vperm.xlu0 %611, %v764_v20  }
  0x1e   :  { %588 = vmatmul.msk.f32.gmra.mxu1 %vm189_vm1, %v183_v24  ;;  %612 = vset.pattern.permute.xlu1 %v629_v29 }
  0x1f   :  { %411 = vperm.xlu1 %612, %v704_v6   ;;  %613 = vset.pattern.permute.xlu2 %v629_v29 }
  0x20   :  { %406 = vperm.xlu2 %613, %v709_v7  }
  0x25   :  { %579 = vmatmul.msk.f32.gmra.mxu0 %vm96_vm0, %v36_v25 }
  0x26   :  { %589 = vmatmul.msk.f32.gmra.mxu1 %vm189_vm1, %v184_v26 }
  0x28   :  { %401 = vperm.xlu2 %613, %v742_v15  }
  0x2d   :  { %580 = vmatmul.msk.f32.gmra.mxu0 %vm96_vm0, %v37_v27 }
  0x2e   :  { %590 = vmatmul.msk.f32.gmra.mxu1 %vm189_vm1, %v185_v28 }
  0x61   :  { %v94_v33 = vpop.permute.xlu2 %93 }
  0x69   :  { %v54_v38 = vpop.permute.xlu2 %53 }
  0x71   :  { %v84_v44 = vpop.permute.xlu2 %83 }
  0x76   :  { %v64_v32 = vpop.permute.xlu0 %63 }
  0x78   :  { %v59_v37 = vpop.permute.xlu1 %58 }
  0x7e   :  { %v79_v36 = vpop.permute.xlu0 %78 }
  0x80   :  { %v74_v42 = vpop.permute.xlu1 %73 }
  0x82   :  { %v144_v30 = vpop.f32.mrf.mxu0 }
  0x83   :  { %v804_v31 = vpop.f32.mrf.mxu1  ;;  %v145_v47 = vadd.f32 %v144_v30, %v54_v38 }
  0x86   :  { %v69_v43 = vpop.permute.xlu0 %68 }
  0x88   :  { %v162_v41 = vpop.f32.mrf.mxu3  ;;  %v89_v54 = vpop.permute.xlu1 %88 }
  0x89   :  { %v163_v50 = vadd.f32 %v162_v41, %v84_v44 }
  0x8a   :  { %v147_v34 = vpop.f32.mrf.mxu0  ;;  %v252_v51 = vpop.f32.mrf.mxu2 }
  0x8b   :  { %v806_v35 = vpop.f32.mrf.mxu1  ;;  %v148_v57 = vadd.f32 %v147_v34, %v59_v37  ;;  %v287_v62 = vmul.f32 %v252_v51, %v252_v51  ;;  %v262_v2 = vsel %vm258_vm2, %v252_v51, 0.0 }
  0x8d   :  { %v292_v8 = vsel %vm258_vm2, %v287_v62, 0.0 }
  0x90   :  { %v165_v52 = vpop.f32.mrf.mxu3 }
  0x91   :  { %v166_v60 = vadd.f32 %v165_v52, %v89_v54 }
  0x92   :  { %v150_v39 = vpop.f32.mrf.mxu0  ;;  %v255_v1 = vpop.f32.mrf.mxu2 }
  0x93   :  { %v808_v40 = vpop.f32.mrf.mxu1  ;;  %v151_v10 = vadd.f32 %v150_v39, %v64_v32  ;;  %v288_v16 = vmul.f32 %v255_v1, %v255_v1  ;;  %v264_v23 = vsel %vm258_vm2, %v255_v1, 0.0  ;;  %v630_v39 = vmov 2  }
  0x94   :  { %614 = vset.pattern.permute.xlu1 %v630_v39  ;;  %615 = vset.pattern.permute.xlu0 %v630_v39 }
  0x95   :  { %v294_v37 = vsel %vm258_vm2, %v288_v16, 0.0  ;;  %440 = vperm.xlu1 %614, %v764_v20   ;;  %436 = vperm.xlu0 %615, %v704_v6   ;;  %v336_v6 = vld [vmem:[%s885_s2] sm:$0xff] }
  0x96   :  { %616 = vset.pattern.permute.xlu2 %v630_v39  ;;  %v407_v39 = vpop.permute.xlu2 %406 }
  0x97   :  { %428 = vperm.xlu2 %616, %v742_v15  }
  0x98   :  { %v168_v4 = vpop.f32.mrf.mxu3 }
  0x99   :  { %v169_v27 = vadd.f32 %v168_v4, %v94_v33 }
  0x9a   :  { %v153_v45 = vpop.f32.mrf.mxu0 }
  0x9b   :  { %v810_v46 = vpop.f32.mrf.mxu1  ;;  %v154_v48 = vadd.f32 %v153_v45, %v69_v43 }
  0x9d   :  { %v171_v49 = vmax.f32 %v145_v47, %v154_v48  ;;  %432 = vperm.xlu1 %614, %v709_v7  }
  0x9f   :  { %v174_v53 = vmax.f32 %v171_v49, %v163_v50 }
  0xa1   :  { %v812_v59 = vmax.f32 %v174_v53, 0.0 }
  0xa2   :  { %v156_v55 = vpop.f32.mrf.mxu0 }
  0xa3   :  { %v246_v56 = vpop.f32.mrf.mxu1  ;;  %v157_v58 = vadd.f32 %v156_v55, %v74_v42  ;;  %v302_v3 = vmul.f32 %v812_v59, %v812_v59  ;;  %v272_v11 = vsel %vm258_vm2, %v812_v59, 0.0 }
  0xa4   :  { %v285_v63 = vmul.f32 %v246_v56, %v246_v56  ;;  %v259_v5 = vsel %vm258_vm2, %v246_v56, 0.0 }
  0xa5   :  { %v172_v61 = vmax.f32 %v148_v57, %v157_v58  ;;  %v305_v26 = vsel %vm258_vm2, %v302_v3, 0.0 }
  0xa6   :  { %v289_v12 = vsel %vm258_vm2, %v285_v63, 0.0 }
  0xa7   :  { %v175_v0 = vmax.f32 %v172_v61, %v166_v60 }
  0xa9   :  { %v178_v9 = vmax.f32 %v175_v0, 0.0 }
  0xaa   :  { %v159_v13 = vpop.f32.mrf.mxu0 }
  0xab   :  { %v249_v14 = vpop.f32.mrf.mxu1  ;;  %v160_v17 = vadd.f32 %v159_v13, %v79_v36  ;;  %v273_v21 = vsel %vm258_vm2, %v178_v9, 0.0  ;;  %v303_v25 = vmul.f32 %v178_v9, %v178_v9  ;;  %v338_v13 = vld [vmem:[%s885_s2 + $0x10] sm:$0xff] }
  0xac   :  { %v260_v18 = vsel %vm258_vm2, %v249_v14, 0.0  ;;  %v286_v19 = vmul.f32 %v249_v14, %v249_v14  ;;  %v274_v24 = vadd.f32 %v273_v21, %v272_v11  ;;  %v339_v21 = vld [vmem:[%s885_s2 + $0x18] sm:$0xff] }
  0xad   :  { %v261_v22 = vadd.f32 %v260_v18, %v259_v5  ;;  %v173_v28 = vmax.f32 %v151_v10, %v160_v17  ;;  %v306_v34 = vsel %vm258_vm2, %v303_v25, 0.0 }
  0xae   :  { %v290_v29 = vsel %vm258_vm2, %v286_v19, 0.0  ;;  %v307_v38 = vadd.f32 %v306_v34, %v305_v26 }
  0xaf   :  { %v263_v30 = vadd.f32 %v262_v2, %v261_v22  ;;  %v291_v32 = vadd.f32 %v290_v29, %v289_v12  ;;  %v176_v36 = vmax.f32 %v173_v28, %v169_v27  ;;  %v337_v2 = vld [vmem:[%s885_s2 + $0x8] sm:$0xff]  ;;  %v631_v22 = vmov 3  }
  0xb0   :  { %617 = vset.pattern.permute.xlu1 %v631_v22 }
  0xb1   :  { %v293_v41 = vadd.f32 %v292_v8, %v291_v32  ;;  %v265_v42 = vadd.f32 %v264_v23, %v263_v30  ;;  %v179_v33 = vmax.f32 %v176_v36, 0.0  ;;  %558 = vperm.xlu1 %617, %v742_v15  }
  0xb3   :  { %v266_v43 = vrot.slane %v265_v42, 4  ;;  %v295_v44 = vadd.f32 %v294_v37, %v293_v41  ;;  %v276_v45 = vsel %vm275_vm3, %v179_v33, 0.0  ;;  %v304_v47 = vmul.f32 %v179_v33, %v179_v33  ;;  %593 = vmatpush.msk.msrb.mxu2 %vm353_vm4, %v179_v33  ;;  %v412_v41 = vpop.permute.xlu1 %411 }
  0xb4   :  { %v277_v49 = vadd.f32 %v276_v45, %v274_v24 }
  0xb5   :  { %v267_v48 = vadd.f32 %v266_v43, %v265_v42  ;;  %v296_v50 = vrot.slane %v295_v44, 4  ;;  %v308_v51 = vsel %vm275_vm3, %v304_v47, 0.0  ;;  %371 = vmatpush.msrb.mxu2 %v178_v9  ;;  %v402_v42 = vpop.permute.xlu2 %401 }
  0xb6   :  { %v278_v52 = vrot.slane %v277_v49, 4  ;;  %v309_v54 = vadd.f32 %v308_v51, %v307_v38 }
  0xb7   :  { %v268_v20 = vrot.slane %v267_v48, 2  ;;  %v297_v53 = vadd.f32 %v296_v50, %v295_v44  ;;  %372 = vmatpush.msrb.mxu2 %v812_v59 }
  0xb8   :  { %v279_v56 = vadd.f32 %v278_v52, %v277_v49  ;;  %v310_v58 = vrot.slane %v309_v54, 4  ;;  %594 = vmatmul.msk.f32.vlgmr.msrb.gmra.mxu2 %vm340_vm5, %v336_v6 }
  0xb9   :  { %v269_v55 = vadd.f32 %v268_v20, %v267_v48  ;;  %v298_v57 = vrot.slane %v297_v53, 2 }
  0xba   :  { %v280_v61 = vrot.slane %v279_v56, 2  ;;  %v311_v62 = vadd.f32 %v310_v58, %v309_v54 }
  0xbb   :  { %v270_v60 = vrot.slane %v269_v55, 1  ;;  %v299_v0 = vadd.f32 %v298_v57, %v297_v53  ;;  %v417_v53 = vpop.permute.xlu0 %416 }
  0xbc   :  { %v281_v63 = vadd.f32 %v280_v61, %v279_v56  ;;  %v312_v1 = vrot.slane %v311_v62, 2 }
  0xbd   :  { %v271_v3 = vadd.f32 %v270_v60, %v269_v55  ;;  %v300_v8 = vrot.slane %v299_v0, 1 }
  0xbe   :  { %v282_v59 = vrot.slane %v281_v63, 1  ;;  %v313_v4 = vadd.f32 %v312_v1, %v311_v62 }
  0xbf   :  { %v301_v7 = vadd.f32 %v300_v8, %v299_v0 }
  0xc0   :  { %v283_v5 = vadd.f32 %v282_v59, %v281_v63  ;;  %v314_v9 = vrot.slane %v313_v4, 1  ;;  %595 = vmatmul.msk.f32.gmra.mxu2 %vm340_vm5, %v337_v2 }
  0xc2   :  { %v284_v10 = vadd.f32 %v283_v5, %v271_v3  ;;  %v315_v11 = vadd.f32 %v314_v9, %v313_v4 }
  0xc4   :  { %v317_v12 = vmul.f32 0.01923077, %v284_v10  ;;  %v316_v16 = vadd.f32 %v315_v11, %v301_v7 }
  0xc6   :  { %v318_v14 = vmul.f32 52.0, %v317_v12 }
  0xc8   :  { %v319_v17 = vmul.f32 %v318_v14, %v317_v12  ;;  %596 = vmatmul.msk.f32.gmra.mxu2 %vm340_vm5, %v338_v13 }
  0xca   :  { %v320_v18 = vsub.f32 %v316_v16, %v319_v17 }
  0xcc   :  { %v321_v19 = vmul.f32 0.019607844, %v320_v18 }
  0xce   :  { %620 = vrsqrt.f32 %v321_v19  ;;  %vm329_vm6 = vcmp.eq.f32.partialorder %v321_v19, inf  ;;  %v332_v30 = vand.u32 2147483648, %v321_v19  ;;  %vm331_vm7 = vcmp.eq.f32.partialorder %v321_v19, 0.0 }
  0xd0   :  { %597 = vmatmul.msk.f32.gmra.mxu2 %vm340_vm5, %v339_v21 }
  0xd4   :  { %v621_v23 = vpop.eup %620 }
  0xd5   :  { %v323_v24 = vmul.f32 %v621_v23, %v321_v19 }
  0xd7   :  { %v324_v25 = vmul.f32 %v621_v23, %v323_v24 }
  0xd9   :  { %v325_v26 = vmul.f32 0.5, %v324_v25 }
  0xdb   :  { %v326_v27 = vsub.f32 1.5, %v325_v26 }
  0xdd   :  { %v327_v28 = vmul.f32 %v621_v23, %v326_v27 }
  0xdf   :  { %v328_v29 = vmul.f32 %v327_v28, %v321_v19  ;;  %v500_v28 = vld [vmem:[%s886_s3] sm:$0xff] }
  0xe1   :  { %v330_v32 = vsel %vm329_vm6, %v321_v19, %v328_v29 }
  0xe2   :  { %v333_v34 = vsel %vm331_vm7, %v332_v30, %v330_v32  ;;  %v525_v30 = vld [vmem:[%s887_s8] sm:$0xf] }
  0xe3   :  { %v334_v36 = vadd.f32 1e-06, %v333_v34 }
  0xe5   :  { %622 = vrcp.f32 %v334_v36 }
  0xeb   :  { %v623_v37 = vpop.eup %622 }
  0xec   :  { %v394_v38 = vmul.f32 %v623_v37, %v317_v12 }
  0xee   :  { %v419_v45 = vmul.f32 %v402_v42, %v394_v38  ;;  %v420_v20 = vmul.f32 %v407_v39, %v394_v38  ;;  %v421_v62 = vmul.f32 %v412_v41, %v394_v38  ;;  %v422_v12 = vmul.f32 %v417_v53, %v394_v38  ;;  %v524_v42 = vld [vmem:[%s888_s4] sm:$0xff] }
  0xf1   :  { %v429_v49 = vpop.permute.xlu2 %428 }
 0x107   :  { %v441_v44 = vpop.permute.xlu1 %440  ;;  %v437_v59 = vpop.permute.xlu0 %436 }
 0x10f   :  { %v433_v54 = vpop.permute.xlu1 %432 }
 0x13b   :  { %v374_v33 = vpop.f32.mrf.mxu2 }
 0x13c   :  { %v386_v43 = vadd.f32 %v374_v33, %v804_v31 }
 0x13e   :  { %v390_v47 = vmul.f32 %v623_v37, %v386_v43 }
 0x140   :  { %v423_v48 = vsub.f32 %v390_v47, %v419_v45 }
 0x142   :  { %v443_v51 = vadd.f32 %v429_v49, %v423_v48 }
 0x143   :  { %v377_v50 = vpop.f32.mrf.mxu2 }
 0x144   :  { %v387_v6 = vadd.f32 %v377_v50, %v806_v35  ;;  %v447_v55 = vmax.f32 %v443_v51, 0.0  ;;  %v632_v35 = vmov 4  }
 0x145   :  { %618 = vset.pattern.permute.xlu2 %v632_v35  ;;  %619 = vset.pattern.permute.xlu0 %v632_v35 }
 0x146   :  { %v391_v52 = vmul.f32 %v623_v37, %v387_v6  ;;  %v465_v60 = vmul.f32 %v447_v55, %v447_v55  ;;  %v451_v63 = vsel %vm258_vm2, %v447_v55, 0.0  ;;  %564 = vperm.xlu2 %618, %v742_v15  }
 0x148   :  { %v424_v56 = vsub.f32 %v391_v52, %v420_v20  ;;  %v469_v4 = vsel %vm258_vm2, %v465_v60, 0.0 }
 0x14a   :  { %v444_v57 = vadd.f32 %v433_v54, %v424_v56 }
 0x14b   :  { %v380_v58 = vpop.f32.mrf.mxu2 }
 0x14c   :  { %v448_v61 = vmax.f32 %v444_v57, 0.0  ;;  %v388_v31 = vadd.f32 %v380_v58, %v808_v40 }
 0x14e   :  { %v452_v0 = vsel %vm258_vm2, %v448_v61, 0.0  ;;  %v466_v1 = vmul.f32 %v448_v61, %v448_v61  ;;  %v392_v2 = vmul.f32 %v623_v37, %v388_v31 }
 0x14f   :  { %v453_v3 = vadd.f32 %v452_v0, %v451_v63 }
 0x150   :  { %v470_v5 = vsel %vm258_vm2, %v466_v1, 0.0  ;;  %v425_v8 = vsub.f32 %v392_v2, %v421_v62  ;;  %v559_v62 = vpop.permute.xlu1 %558 }
 0x151   :  { %v471_v40 = vadd.f32 %v470_v5, %v469_v4 }
 0x152   :  { %v445_v9 = vadd.f32 %v437_v59, %v425_v8 }
 0x153   :  { %v383_v10 = vpop.f32.mrf.mxu2 }
 0x154   :  { %v449_v7 = vmax.f32 %v445_v9, 0.0  ;;  %v389_v11 = vadd.f32 %v383_v10, %v810_v46 }
 0x156   :  { %v454_v13 = vsel %vm258_vm2, %v449_v7, 0.0  ;;  %v467_v14 = vmul.f32 %v449_v7, %v449_v7  ;;  %v393_v16 = vmul.f32 %v623_v37, %v389_v11 }
 0x157   :  { %v455_v17 = vadd.f32 %v454_v13, %v453_v3 }
 0x158   :  { %v472_v18 = vsel %vm258_vm2, %v467_v14, 0.0  ;;  %v426_v15 = vsub.f32 %v393_v16, %v422_v12 }
 0x159   :  { %v473_v19 = vadd.f32 %v472_v18, %v471_v40 }
 0x15a   :  { %v446_v21 = vadd.f32 %v441_v44, %v426_v15 }
 0x15c   :  { %v450_v22 = vmax.f32 %v446_v21, 0.0 }
 0x15e   :  { %v456_v23 = vsel %vm258_vm2, %v450_v22, 0.0  ;;  %v468_v24 = vmul.f32 %v450_v22, %v450_v22  ;;  %516 = vmatpush.msrb.mxu3 %v450_v22 }
 0x15f   :  { %v457_v25 = vadd.f32 %v456_v23, %v455_v17 }
 0x160   :  { %v474_v26 = vsel %vm258_vm2, %v468_v24, 0.0  ;;  %517 = vmatpush.msrb.mxu3 %v449_v7 }
 0x161   :  { %v458_v46 = vrot.slane %v457_v25, 4  ;;  %v475_v27 = vadd.f32 %v474_v26, %v473_v19 }
 0x162   :  { %518 = vmatpush.msrb.mxu3 %v448_v61 }
 0x163   :  { %v476_v29 = vrot.slane %v475_v27, 4  ;;  %v459_v32 = vadd.f32 %v458_v46, %v457_v25 }
 0x164   :  { %519 = vmatpush.msrb.mxu3 %v447_v55 }
 0x165   :  { %v477_v34 = vadd.f32 %v476_v29, %v475_v27  ;;  %598 = vmatmul.msk.f32.vlgmr.msrb.gmra.mxu3 %vm189_vm1, %v500_v28  ;;  %v460_v36 = vrot.slane %v459_v32, 2 }
 0x166   :  { %599 = vmatpush.xpose.msk.msra.mxu3 %vm526_vm8, %v525_v30 }
 0x167   :  { %v478_v37 = vrot.slane %v477_v34, 2  ;;  %v461_v38 = vadd.f32 %v460_v36, %v459_v32 }
 0x169   :  { %v479_v39 = vadd.f32 %v478_v37, %v477_v34  ;;  %v462_v41 = vrot.slane %v461_v38, 1 }
 0x16b   :  { %v463_v33 = vadd.f32 %v462_v41, %v461_v38  ;;  %v480_v44 = vrot.slane %v479_v39, 1 }
 0x16d   :  { %600 = vmatmul.msk.f32.vlgmr.msra.gmra.mxu3 %vm526_vm8, %v524_v42  ;;  %v464_v43 = vmul.f32 0.03125, %v463_v33  ;;  %v481_v47 = vadd.f32 %v480_v44, %v479_v39 }
 0x16f   :  { %v482_v45 = vmul.f32 32.0, %v464_v43 }
 0x171   :  { %v483_v48 = vmul.f32 %v482_v45, %v464_v43 }
 0x173   :  { %v484_v49 = vsub.f32 %v481_v47, %v483_v48 }
 0x175   :  { %v485_v50 = vmul.f32 0.032258064, %v484_v49 }
 0x177   :  { %624 = vrsqrt.f32 %v485_v50  ;;  %vm493_vm9 = vcmp.eq.f32.partialorder %v485_v50, inf  ;;  %v496_v56 = vand.u32 2147483648, %v485_v50  ;;  %vm495_vm10 = vcmp.eq.f32.partialorder %v485_v50, 0.0 }
 0x17d   :  { %v625_v51 = vpop.eup %624 }
 0x17e   :  { %v487_v6 = vmul.f32 %v625_v51, %v485_v50 }
 0x180   :  { %v488_v20 = vmul.f32 %v625_v51, %v487_v6 }
 0x182   :  { %v489_v52 = vmul.f32 0.5, %v488_v20 }
 0x184   :  { %v490_v53 = vsub.f32 1.5, %v489_v52 }
 0x186   :  { %v491_v54 = vmul.f32 %v625_v51, %v490_v53 }
 0x188   :  { %v492_v55 = vmul.f32 %v491_v54, %v485_v50 }
 0x18a   :  { %v494_v57 = vsel %vm493_vm9, %v485_v50, %v492_v55 }
 0x18b   :  { %v497_v58 = vsel %vm495_vm10, %v496_v56, %v494_v57 }
 0x18c   :  { %v498_v60 = vadd.f32 1e-06, %v497_v58 }
 0x18e   :  { %626 = vrcp.f32 %v498_v60 }
 0x194   :  { %v627_v61 = vpop.eup %626 }
 0x195   :  { %v554_v31 = vmul.f32 %v627_v61, %v464_v43 }
 0x197   :  { %v561_v0 = vmul.f32 %v559_v62, %v554_v31 }
 0x1a0   :  { %v565_v35 = vpop.permute.xlu2 %564 }
 0x1e8   :  { %v521_v63 = vpop.f32.mrf.mxu3 }
 0x1e9   :  { %v553_v1 = vmul.f32 %v627_v61, %v521_v63 }
 0x1eb   :  { %v562_v2 = vsub.f32 %v553_v1, %v561_v0 }
 0x1ed   :  { %v567_v3 = vadd.f32 %v565_v35, %v562_v2 }
 0x1f0   :  { %v550_v59 = vpop.f32.mrf.mxu3 }
 0x1f1   :  { %v568_v4 = vadd.f32 %v567_v3, %v550_v59 }
 0x1f3   :  { %569 = vst.msk [vmem:[%s889_s9] sm:$0xff] %vm258_vm2, %v568_v4 }

</bundles_post_ra>
